<compile_context>
chip_gen: v7x
topology: tpu7x:2x2x1
jax: 0.10.0
libtpu: 0.0.40
codegen_flags: <defaults>
</compile_context>

<pallas_src>
import math

import numpy as np
import jax
import jax.numpy as jnp
from jax.experimental import pallas as pl
from jax.experimental.pallas import tpu as pltpu

_LANES = 128
_SUBLANE_BY_ITEMSIZE = {4: 8, 2: 16, 1: 32}
_MIB = 1024 * 1024


def _wap_kernel(w_ref, x_ref, o_ref):
    # w_ref: SMEM (N,) pre-normalized (softmax) weights, f32
    # x_ref: VMEM (N, TR, 128) input block
    # o_ref: VMEM (TR, 128) output block
    n = x_ref.shape[0]
    acc = w_ref[0] * x_ref[0].astype(jnp.float32)
    if n <= 16:
        # Small N: static unroll (cheap, LLO schedules it freely).
        for i in range(1, n):
            acc = acc + w_ref[i] * x_ref[i].astype(jnp.float32)
    else:
        # Large N: rolled loop keeps code size / live ranges bounded; the
        # kernel is HBM-bound so the loop form costs nothing in throughput.
        acc = jax.lax.fori_loop(
            1, n, lambda i, a: a + w_ref[i] * x_ref[i].astype(jnp.float32), acc)
    o_ref[...] = acc.astype(o_ref.dtype)


def weighted_average_pooling(weights, inputs, *,
                             target_tile_bytes=8 * _MIB,
                             min_chunk_bytes=512 * 1024,
                             vmem_budget_bytes=40 * _MIB):
    """weights: (N,) parameter; inputs: (N, ...). Returns array of shape inputs.shape[1:]."""
    N = inputs.shape[0]
    rest = inputs.shape[1:]
    M = int(math.prod(rest)) if rest else 1
    in_isz = jnp.dtype(inputs.dtype).itemsize
    out_isz = in_isz
    sub = _SUBLANE_BY_ITEMSIZE.get(in_isz, 8)

    # Hoisted softmax (done once in the wrapper, not per grid step).
    nw = jax.nn.softmax(weights.astype(jnp.float32).reshape(-1), axis=0)

    # --- lane-dense view: (N, R, 128) with R = cdiv(M, 128) -------------------
    R = pl.cdiv(M, _LANES)
    M_pad = R * _LANES

    # --- tile-row sizing -------------------------------------------------------
    # VMEM per row of TR (double-buffered input + output + f32 acc headroom).
    per_tr = 2 * N * _LANES * in_isz + 2 * _LANES * out_isz + 2 * _LANES * 4
    tr_vmem = max(sub, (vmem_budget_bytes // per_tr) // sub * sub)
    # ~target_tile_bytes per input block, and per-N HBM chunk >= min_chunk_bytes.
    tr_want = max(target_tile_bytes // (N * _LANES * in_isz),
                  min_chunk_bytes // (_LANES * in_isz))
    tr = max(sub, (min(tr_want, tr_vmem) // sub) * sub)
    if tr >= R:
        tr = R                      # single full-extent block (always legal)
        g = 1
    else:
        g = pl.cdiv(R, tr)          # ragged last block is handled by Pallas

    x2 = inputs.reshape(N, M)
    if M_pad != M:
        # TODO(synk): this minimal lane pad is still one extra HBM pass when
        # M % 128 != 0; could be removed via allow_input_fusion or a manual-DMA
        # (pl.ANY) tail path.  For 128-divisible M there is no pad at all.
        x2 = jnp.pad(x2, ((0, 0), (0, M_pad - M)))
    x3 = x2.reshape(N, R, _LANES)

    in_block = N * tr * _LANES * in_isz
    out_block = tr * _LANES * out_isz
    vmem_needed = 2 * in_block + 2 * out_block + 2 * tr * _LANES * 4
    vmem_limit = int(min(max(vmem_needed + 4 * _MIB, 32 * _MIB), 48 * _MIB))

    cost = pl.CostEstimate(
        flops=2 * N * M_pad,
        transcendentals=0,
        bytes_accessed=(N + 1) * M_pad * in_isz + N * 4,
    )

    out = pl.pallas_call(
        _wap_kernel,
        out_shape=jax.ShapeDtypeStruct((R, _LANES), inputs.dtype),
        grid_spec=pltpu.PrefetchScalarGridSpec(
            num_scalar_prefetch=1,                           # normalized weights -> SMEM
            grid=(g,),
            in_specs=[pl.BlockSpec((N, tr, _LANES), lambda j, w: (0, j, 0))],
            out_specs=pl.BlockSpec((tr, _LANES), lambda j, w: (j, 0)),
        ),
        compiler_params=pltpu.CompilerParams(
            dimension_semantics=("parallel",),
            vmem_limit_bytes=vmem_limit,
        ),
        cost_estimate=cost,
    )(nw, x3)

    out_flat = out.reshape(M_pad)
    if M_pad != M:
        out_flat = out_flat[:M]      # only when a lane pad was needed
    return out_flat.reshape(rest)


def _reference(weights, inputs):
    nw = jax.nn.softmax(weights.astype(jnp.float32), axis=0)
    nw = nw.reshape((-1,) + (1,) * (inputs.ndim - 1))
    return jnp.sum(nw * inputs.astype(jnp.float32), axis=0).astype(inputs.dtype)


if __name__ == "__main__":
    key = jax.random.PRNGKey(0)
    k0, k1, k2, k3 = jax.random.split(key, 4)

    # Module-like setup: dim = N, weights init = ones(N); inputs stacked (N, C, H, W).
    N, C, H, W = 4, 4, 16, 16
    weights = jnp.ones((N,), dtype=jnp.float32)
    x = jax.random.normal(k0, (N, C, H, W), dtype=jnp.float32)
    out = jax.block_until_ready(weighted_average_pooling(weights, x))
    np.testing.assert_allclose(np.asarray(out), np.asarray(_reference(weights, x)),
                               rtol=1e-5, atol=1e-5)

    # Non-uniform weights + M not a multiple of 128 (minimal lane-pad path).
    w2 = jax.random.normal(k1, (3,), dtype=jnp.float32)
    x2 = jax.random.normal(k2, (3, 5, 9, 7), dtype=jnp.float32)
    out2 = jax.block_until_ready(weighted_average_pooling(w2, x2))
    np.testing.assert_allclose(np.asarray(out2), np.asarray(_reference(w2, x2)),
                               rtol=1e-5, atol=1e-5)

    # Multi-step grid with a ragged last block (small tiles forced for the test).
    w3 = jax.random.normal(k3, (4,), dtype=jnp.float32)
    x3 = jax.random.normal(k0, (4, 5, 63, 64), dtype=jnp.float32)
    out3 = jax.block_until_ready(
        weighted_average_pooling(w3, x3,
                                 target_tile_bytes=64 * 1024,
                                 min_chunk_bytes=16 * 1024))
    np.testing.assert_allclose(np.asarray(out3), np.asarray(_reference(w3, x3)),
                               rtol=1e-4, atol=1e-5)

    print("KERNEL_OK")
</pallas_src>

<mosaic_0001>
module attributes {stable_mosaic.version = 11 : i64} {
  func.func @_wap_kernel(%arg0: i32, %arg1: memref<4xf32, #tpu.memory_space<smem>>, %arg2: memref<4x8x128xf32, #tpu.memory_space<vmem>>, %arg3: memref<8x128xf32, #tpu.memory_space<vmem>>) attributes {dimension_semantics = [#tpu.dimension_semantics<parallel>], iteration_bounds = array<i64: 1>, scalar_prefetch = 1 : i64, scratch_operands = 0 : i64, tpu.core_type = #tpu.core_type<tc>, window_params = [{transform_indices = @transform_0, window_bounds = array<i64: 4, 8, 128>}, {transform_indices = @transform_1, window_bounds = array<i64: 8, 128>}]} {
    %c0 = arith.constant 0 : index
    %0 = memref.load %arg1[%c0] : memref<4xf32, #tpu.memory_space<smem>>
    %c0_0 = arith.constant 0 : index
    %c0_1 = arith.constant 0 : index
    %c0_2 = arith.constant 0 : index
    %1 = vector.load %arg2[%c0_0, %c0_1, %c0_2] : memref<4x8x128xf32, #tpu.memory_space<vmem>>, vector<1x8x128xf32>
    %2 = vector.shape_cast %1 : vector<1x8x128xf32> to vector<8x128xf32>
    %3 = vector.broadcast %0 : f32 to vector<8x128xf32>
    %4 = arith.mulf %3, %2 : vector<8x128xf32>
    %c1 = arith.constant 1 : index
    %5 = memref.load %arg1[%c1] : memref<4xf32, #tpu.memory_space<smem>>
    %c1_3 = arith.constant 1 : index
    %c0_4 = arith.constant 0 : index
    %c0_5 = arith.constant 0 : index
    %6 = vector.load %arg2[%c1_3, %c0_4, %c0_5] : memref<4x8x128xf32, #tpu.memory_space<vmem>>, vector<1x8x128xf32>
    %7 = vector.shape_cast %6 : vector<1x8x128xf32> to vector<8x128xf32>
    %8 = vector.broadcast %5 : f32 to vector<8x128xf32>
    %9 = arith.mulf %8, %7 : vector<8x128xf32>
    %10 = arith.addf %4, %9 : vector<8x128xf32>
    %c2 = arith.constant 2 : index
    %11 = memref.load %arg1[%c2] : memref<4xf32, #tpu.memory_space<smem>>
    %c2_6 = arith.constant 2 : index
    %c0_7 = arith.constant 0 : index
    %c0_8 = arith.constant 0 : index
    %12 = vector.load %arg2[%c2_6, %c0_7, %c0_8] : memref<4x8x128xf32, #tpu.memory_space<vmem>>, vector<1x8x128xf32>
    %13 = vector.shape_cast %12 : vector<1x8x128xf32> to vector<8x128xf32>
    %14 = vector.broadcast %11 : f32 to vector<8x128xf32>
    %15 = arith.mulf %14, %13 : vector<8x128xf32>
    %16 = arith.addf %10, %15 : vector<8x128xf32>
    %c3 = arith.constant 3 : index
    %17 = memref.load %arg1[%c3] : memref<4xf32, #tpu.memory_space<smem>>
    %c3_9 = arith.constant 3 : index
    %c0_10 = arith.constant 0 : index
    %c0_11 = arith.constant 0 : index
    %18 = vector.load %arg2[%c3_9, %c0_10, %c0_11] : memref<4x8x128xf32, #tpu.memory_space<vmem>>, vector<1x8x128xf32>
    %19 = vector.shape_cast %18 : vector<1x8x128xf32> to vector<8x128xf32>
    %20 = vector.broadcast %17 : f32 to vector<8x128xf32>
    %21 = arith.mulf %20, %19 : vector<8x128xf32>
    %22 = arith.addf %16, %21 : vector<8x128xf32>
    %c0_12 = arith.constant 0 : index
    %c0_13 = arith.constant 0 : index
    %23 = vector.load %arg3[%c0_12, %c0_13] : memref<8x128xf32, #tpu.memory_space<vmem>>, vector<8x128xf32>
    tpu.vector_store %arg3[%c0_12, %c0_13], %22 {strides = array<i32>} : memref<8x128xf32, #tpu.memory_space<vmem>>, vector<8x128xf32>,
    return
  }
  func.func @transform_0(%arg0: i32, %arg1: memref<4xf32, #tpu.memory_space<smem>>) -> (i32, i32, i32) {
    %c0_i32 = arith.constant 0 : i32
    %c0_i32_0 = arith.constant 0 : i32
    %c0_i32_1 = arith.constant 0 : i32
    return %c0_i32, %arg0, %c0_i32_0 : i32, i32, i32
  }
  func.func @transform_1(%arg0: i32, %arg1: memref<4xf32, #tpu.memory_space<smem>>) -> (i32, i32) {
    %c0_i32 = arith.constant 0 : i32
    %c0_i32_0 = arith.constant 0 : i32
    return %arg0, %c0_i32 : i32, i32
  }
}

</mosaic_0001>

<bundles_post_ra>
// kernel: tpu_custom_call.1
= control target key start
LH: loop header
LB: loop body
LE: loop exit
PB: predicated region body
PF: predicated region fallthrough
CT: control target
= control target key end

     0   :  { %s190_s0 = inlined_call_operand.hbm [shape: f32[4], index: 0, kind: input, shape index: {}]   ;;  %s191_s1 = inlined_call_operand.hbm [shape: f32[4,8,128], index: 1, kind: input, shape index: {}]   ;;  %s192_s2 = inlined_call_operand.hbm [shape: f32[8,128], index: 2, kind: output, shape index: {}]  }
   0x1   :  { %s74_s11 = scalar_lea.hbm %s190_s0, 16 }
   0x2   :  { %p75_p0 = scmp.ne.s32.totalorder %s190_s0, %s74_s11  ;;  %p78_p1 = scmp.lt.u32.totalorder %s74_s11, %s190_s0 }
   0x4   :  { %p80_p2 = pnand %p78_p1, %p75_p0 }
   0x6   :  { %83 = shalt.err (!%p80_p2)  }
   0x7   :  { %s134_s16 = smov [#allocation3]  }
   0x8   :  { %8 = dma.hbm_to_smem %s190_s0, 16, %s134_s16, [#allocation2] }
   0x9   :  { %128 = dma.done.wait [#allocation2], 16 }
   0xa   :  { %129 = vsyncadd [#allocation2], 4294967280 }
   0xb   :  { %10 = sfence }
   0xc   :  { %11 = vsyncpa [#allocation5], 0 }
   0xd   :  { %12 = vsyncpa [#allocation6], 0  ;;  %s135_s19 = smov [#allocation4]   ;;  %s84_s23 = scalar_lea.hbm %s191_s1, 512 }
   0xe   :  { %s18_s20 = sshll.u32 %s135_s19, 4  ;;  %p85_p3 = scmp.ne.s32.totalorder %s191_s1, %s84_s23  ;;  %s19_s20 = int_to_ptr.vmem [resolvable:$true] %s18_s20 }
   0xf   :  { %p88_p4 = scmp.lt.u32.totalorder %s84_s23, %s191_s1 }
  0x11   :  { %p90_p5 = pnand %p88_p4, %p85_p3 }
  0x13   :  { %93 = shalt.err (!%p90_p5)
}
  0x14   :  { %s94_s0 = scalar_lea.vmem %s19_s20, 512  ;;  %p99_p7 = scmp.lt.s32.totalorder %s19_s20, %s19_s20 }
  0x15   :  { %p95_p6 = scmp.ne.s32.totalorder %s19_s20, %s94_s0  ;;  %p100_p8 = scmp.lt.s32.totalorder %s94_s0, %s94_s0 }
  0x17   :  { %p101_p9 = por %p100_p8, %p99_p7 }
  0x19   :  { %p102_p10 = pnand %p101_p9, %p95_p6 }
  0x1b   :  { %105 = shalt.err (!%p102_p10)
}
  0x1c   :  { %s136_s28 = smov 128   ;;  %s137_s29 = smov 8  }
  0x1d   :  { %24 = dma.hbm_to_vmem [thread:$0]  %s191_s1, 512, %s19_s20, [#allocation5], %s136_s28, %s136_s28, %s137_s29  }
  0x1e   :  { %130 = dma.done.wait [#allocation5], 512  }
  0x1f   :  { %131 = vsyncadd [#allocation5], 4294966784  ;;  %s28_s4 = sld [smem:[#allocation3]]  ;;  %s66_s5 = sld [smem:[#allocation3 + $0x1]]  ;;  %v29_v0 = vld [vmem:[#allocation4] sm:$0xff]  ;;  %v34_v2 = vld [vmem:[#allocation4 + $0x8] sm:$0xff] }
  0x20   :  { %s67_s6 = sld [smem:[#allocation3 + $0x2]]  ;;  %s68_s7 = sld [smem:[#allocation3 + $0x3]]  ;;  %v40_v4 = vld [vmem:[#allocation4 + $0x10] sm:$0xff]  ;;  %v46_v8 = vld [vmem:[#allocation4 + $0x18] sm:$0xff] }
  0x21   :  { %s138_s1 = smov [#allocation7]  }
  0x22   :  { %s57_s8 = sshll.u32 %s138_s1, 4  ;;  %s58_s8 = int_to_ptr.vmem [resolvable:$true] %s57_s8 }
  0x23   :  { %s106_s9 = scalar_lea.vmem %s58_s8, 128  ;;  %p111_p12 = scmp.lt.s32.totalorder %s58_s8, %s58_s8 }
  0x24   :  { %p107_p11 = scmp.ne.s32.totalorder %s58_s8, %s106_s9  ;;  %p112_p13 = scmp.lt.s32.totalorder %s106_s9, %s106_s9 }
  0x25   :  { %v30_v1 = vstv %s28_s4  ;;  %v35_v3 = vstv %s66_s5 }
  0x26   :  { %v31_v5 = vmul.f32 %v30_v1, %v29_v0  ;;  %v36_v6 = vmul.f32 %v35_v3, %v34_v2  ;;  %v41_v7 = vstv %s67_s6  ;;  %v47_v9 = vstv %s68_s7  ;;  %p113_p0 = por %p112_p13, %p111_p12 }
  0x27   :  { %v42_v10 = vmul.f32 %v41_v7, %v40_v4  ;;  %v48_v12 = vmul.f32 %v47_v9, %v46_v8 }
  0x28   :  { %v37_v11 = vadd.f32 %v36_v6, %v31_v5  ;;  %p114_p1 = pnand %p113_p0, %p107_p11 }
  0x2a   :  { %v43_v13 = vadd.f32 %v42_v10, %v37_v11 }
  0x2c   :  { %v49_v14 = vadd.f32 %v48_v12, %v43_v13 }
  0x2e   :  { %50 = vst [vmem:[#allocation7] sm:$0xff] %v49_v14 }
  0x2f   :  { %117 = shalt.err (!%p114_p1)
}
  0x30   :  { %s118_s12 = scalar_lea.hbm %s192_s2, 128 }
  0x31   :  { %p119_p2 = scmp.ne.s32.totalorder %s192_s2, %s118_s12  ;;  %p122_p3 = scmp.lt.u32.totalorder %s118_s12, %s192_s2 }
  0x33   :  { %p124_p4 = pnand %p122_p3, %p119_p2 }
  0x35   :  { %127 = shalt.err (!%p124_p4)
}
  0x36   :  { %60 = dma.vmem_to_hbm [thread:$0]  %s58_s8, 128, %s192_s2, [#allocation6]  }
  0x37   :  { %132 = dma.done.wait [#allocation6], 128  }
  0x38   :  { %133 = vsyncadd [#allocation6], 4294967168 }
  0x39   :  { %64 = vsyncpa [#allocation5], 1 }
  0x3a   :  { %65 = vsyncpa [#allocation6], 1 }

</bundles_post_ra>
